<compile_context>
chip_gen: v7x
topology: tpu7x:2x2x1
jax: 0.10.0
libtpu: 0.0.40
codegen_flags: <defaults>
</compile_context>

<pallas_src>
import jax
import jax.numpy as jnp
from jax import lax
from jax.experimental import pallas as pl
from jax.experimental.pallas import tpu as pltpu

EPS = 1e-5  # nn.BatchNorm1d default


# --------------------------------------------------------------------------- #
# Parameter packing (done ONCE, outside the per-call hot path)
# --------------------------------------------------------------------------- #
def pack_constants(gamma1, beta1, weight, bias, gamma2, beta2):
    """Pack all module parameters into one (S+5, max(S,D)) f32 buffer.

    Rows:
      [0, S)  : weight^T  (lanes [0, D))     -- pre-transposed once, MXU-ready
      S       : gamma1    (lanes [0, S))
      S + 1   : beta1     (lanes [0, S))
      S + 2   : bias      (lanes [0, D))
      S + 3   : gamma2    (lanes [0, D))
      S + 4   : beta2     (lanes [0, D))
    """
    D, S = weight.shape  # PyTorch Linear weight layout is (out, in) = (D, S)
    W = max(S, D)
    c = jnp.zeros((S + 5, W), jnp.float32)
    c = c.at[0:S, 0:D].set(weight.T.astype(jnp.float32))
    c = c.at[S, 0:S].set(gamma1.astype(jnp.float32))
    c = c.at[S + 1, 0:S].set(beta1.astype(jnp.float32))
    c = c.at[S + 2, 0:D].set(bias.astype(jnp.float32))
    c = c.at[S + 3, 0:D].set(gamma2.astype(jnp.float32))
    c = c.at[S + 4, 0:D].set(beta2.astype(jnp.float32))
    return c


# --------------------------------------------------------------------------- #
# Shared per-problem math (traced inside the kernels)
# --------------------------------------------------------------------------- #
def _forward_one(x, w_t, g1, b1, bias, g2, b2):
    """x: (B, S) f32 in vregs. Returns (B, D) f32. Training-mode BN semantics."""
    inv_b = 1.0 / x.shape[0]

    # BatchNorm1d(S): two-pass batch stats (robust), fused scale/shift
    m1 = jnp.sum(x, axis=0, keepdims=True) * inv_b
    xc = x - m1
    v1 = jnp.sum(xc * xc, axis=0, keepdims=True) * inv_b
    y1 = xc * (g1 * lax.rsqrt(v1 + EPS)) + b1                     # (B, S)

    # Linear(S, D): weight already transposed to (S, D); pinned f32 precision
    h = lax.dot_general(
        y1, w_t,
        dimension_numbers=(((1,), (0,)), ((), ())),
        precision=lax.Precision.HIGHEST,
        preferred_element_type=jnp.float32,
    ) + bias                                                       # (B, D)

    # BatchNorm1d(D): two-pass batch stats, fused scale/shift
    m2 = jnp.sum(h, axis=0, keepdims=True) * inv_b
    hc = h - m2
    v2 = jnp.sum(hc * hc, axis=0, keepdims=True) * inv_b
    return hc * (g2 * lax.rsqrt(v2 + EPS)) + b2                    # (B, D)


def _unpack(c_ref, S, D):
    w_t = c_ref[0:S, 0:D]               # (S, D)
    g1 = c_ref[S:S + 1, 0:S]            # (1, S)
    b1 = c_ref[S + 1:S + 2, 0:S]        # (1, S)
    bias = c_ref[S + 2:S + 3, 0:D]      # (1, D)
    g2 = c_ref[S + 3:S + 4, 0:D]        # (1, D)
    b2 = c_ref[S + 4:S + 5, 0:D]        # (1, D)
    return w_t, g1, b1, bias, g2, b2


# --------------------------------------------------------------------------- #
# Single-problem forward: exact module semantics, output (1, B, D)
# --------------------------------------------------------------------------- #
def _make_single_kernel(S, D):
    def kernel(x_ref, c_ref, o_ref):
        w_t, g1, b1, bias, g2, b2 = _unpack(c_ref, S, D)
        o_ref[0] = _forward_one(x_ref[...], w_t, g1, b1, bias, g2, b2)
    return kernel


def reduction_dimension_forward(x, consts, d_model):
    """x: (B, S) f32, consts: pack_constants(...). Returns (1, B, d_model) f32."""
    B, S = x.shape
    D = d_model
    return pl.pallas_call(
        _make_single_kernel(S, D),
        out_shape=jax.ShapeDtypeStruct((1, B, D), jnp.float32),
        in_specs=[
            pl.BlockSpec(x.shape, lambda: (0, 0)),          # activations
            pl.BlockSpec(consts.shape, lambda: (0, 0)),     # packed constants
        ],
        out_specs=pl.BlockSpec((1, B, D), lambda: (0, 0, 0)),
    )(x, consts)


# --------------------------------------------------------------------------- #
# Batched forward: k independent (B, S) problems in one pallas_call
# --------------------------------------------------------------------------- #
def _make_batched_kernel(S, D, kc):
    def kernel(xs_ref, c_ref, o_ref):
        # xs_ref: (kc, B, S), c_ref: packed constants, o_ref: (B, kc*D) lane-dense
        w_t, g1, b1, bias, g2, b2 = _unpack(c_ref, S, D)   # hoisted out of loop
        for j in range(kc):                                 # static unroll, kc small
            out_j = _forward_one(xs_ref[j], w_t, g1, b1, bias, g2, b2)
            o_ref[:, j * D:(j + 1) * D] = out_j
    return kernel


def reduction_dimension_forward_batched(xs, consts, d_model, *, problems_per_step=8):
    """xs: (k, B, S) f32 — k independent inputs, same module parameters.

    Returns (k, B, d_model); slice [j] equals reduction_dimension_forward(xs[j])[0].
    Output is computed into a lane-dense (B, k*D) slab (kc*D >= 128 lanes per grid
    step) and re-laid out in the wrapper (layout plumbing only).
    """
    k, B, S = xs.shape
    D = d_model
    kc = min(problems_per_step, k)
    while k % kc:                       # keep the grid exact
        kc -= 1

    out_flat = pl.pallas_call(
        _make_batched_kernel(S, D, kc),
        out_shape=jax.ShapeDtypeStruct((B, k * D), jnp.float32),
        grid=(k // kc,),
        in_specs=[
            pl.BlockSpec((kc, B, S), lambda i: (i, 0, 0)),
            pl.BlockSpec(consts.shape, lambda i: (0, 0)),
        ],
        out_specs=pl.BlockSpec((B, kc * D), lambda i: (0, i)),
        compiler_params=pltpu.CompilerParams(
            dimension_semantics=("parallel",)),   # shards across v7x's 2 TCs
    )(xs, consts)

    return out_flat.reshape(B, k, D).transpose(1, 0, 2)


# --------------------------------------------------------------------------- #
if __name__ == "__main__":
    # Shapes consistent with the module: batch=8, statistic_nums=16, d_model=32
    B, S, D = 8, 16, 32

    key = jax.random.PRNGKey(0)
    kx, kxs, kw, kb, kg1, kb1, kg2, kb2 = jax.random.split(key, 8)

    x = jax.random.normal(kx, (B, S), dtype=jnp.float32)

    # Deterministic synthetic parameters (same shapes as the nn.Module's params)
    gamma1 = 1.0 + 0.1 * jax.random.normal(kg1, (S,), dtype=jnp.float32)
    beta1 = 0.1 * jax.random.normal(kb1, (S,), dtype=jnp.float32)
    weight = jax.random.normal(kw, (D, S), dtype=jnp.float32) / jnp.sqrt(S)
    bias = 0.1 * jax.random.normal(kb, (D,), dtype=jnp.float32)
    gamma2 = 1.0 + 0.1 * jax.random.normal(kg2, (D,), dtype=jnp.float32)
    beta2 = 0.1 * jax.random.normal(kb2, (D,), dtype=jnp.float32)

    # Pack parameters ONCE (constants; not part of the per-call hot path).
    consts = pack_constants(gamma1, beta1, weight, bias, gamma2, beta2)

    # --- single-problem forward (module semantics) ---
    out = reduction_dimension_forward(x, consts, D)
    out = jax.block_until_ready(out)

    # Pure-JAX reference: full PyTorch-training-mode forward (f32 matmul pinned).
    def ref_forward(xx):
        m1 = xx.mean(axis=0, keepdims=True)
        v1 = ((xx - m1) ** 2).mean(axis=0, keepdims=True)
        y1 = (xx - m1) / jnp.sqrt(v1 + EPS) * gamma1 + beta1
        h = jnp.dot(y1, weight.T, precision=lax.Precision.HIGHEST) + bias
        m2 = h.mean(axis=0, keepdims=True)
        v2 = ((h - m2) ** 2).mean(axis=0, keepdims=True)
        return ((h - m2) / jnp.sqrt(v2 + EPS) * gamma2 + beta2)[None, :, :]

    ref = ref_forward(x)
    assert out.shape == (1, B, D), out.shape
    assert jnp.allclose(out, ref, atol=1e-4, rtol=1e-4), "single-problem mismatch"

    # --- batched forward: k independent problems amortized over one call ---
    k = 32
    xs = jax.random.normal(kxs, (k, B, S), dtype=jnp.float32)
    outs = reduction_dimension_forward_batched(xs, consts, D, problems_per_step=8)
    outs = jax.block_until_ready(outs)
    assert outs.shape == (k, B, D), outs.shape
    refs = jnp.stack([ref_forward(xs[j])[0] for j in range(k)], axis=0)
    assert jnp.allclose(outs, refs, atol=1e-4, rtol=1e-4), "batched mismatch"

    print("KERNEL_OK")
</pallas_src>

<mosaic_0001>
module attributes {stable_mosaic.version = 11 : i64} {
  func.func @kernel(%arg0: memref<8x16xf32, #tpu.memory_space<vmem>>, %arg1: memref<21x32xf32, #tpu.memory_space<vmem>>, %arg2: memref<1x8x32xf32, #tpu.memory_space<vmem>>) attributes {dimension_semantics = [], scalar_prefetch = 0 : i64, scratch_operands = 0 : i64, tpu.core_type = #tpu.core_type<tc>} {
    %c0 = arith.constant 0 : index
    %c0_0 = arith.constant 0 : index
    %0 = vector.load %arg1[%c0, %c0_0] : memref<21x32xf32, #tpu.memory_space<vmem>>, vector<16x32xf32>
    %c16 = arith.constant 16 : index
    %c0_1 = arith.constant 0 : index
    %1 = vector.load %arg1[%c16, %c0_1] : memref<21x32xf32, #tpu.memory_space<vmem>>, vector<1x16xf32>
    %c17 = arith.constant 17 : index
    %c0_2 = arith.constant 0 : index
    %2 = vector.load %arg1[%c17, %c0_2] : memref<21x32xf32, #tpu.memory_space<vmem>>, vector<1x16xf32>
    %c18 = arith.constant 18 : index
    %c0_3 = arith.constant 0 : index
    %3 = vector.load %arg1[%c18, %c0_3] : memref<21x32xf32, #tpu.memory_space<vmem>>, vector<1x32xf32>
    %c19 = arith.constant 19 : index
    %c0_4 = arith.constant 0 : index
    %4 = vector.load %arg1[%c19, %c0_4] : memref<21x32xf32, #tpu.memory_space<vmem>>, vector<1x32xf32>
    %c20 = arith.constant 20 : index
    %c0_5 = arith.constant 0 : index
    %5 = vector.load %arg1[%c20, %c0_5] : memref<21x32xf32, #tpu.memory_space<vmem>>, vector<1x32xf32>
    %c0_6 = arith.constant 0 : index
    %c0_7 = arith.constant 0 : index
    %6 = vector.load %arg0[%c0_6, %c0_7] : memref<8x16xf32, #tpu.memory_space<vmem>>, vector<8x16xf32>
    %cst = arith.constant dense<0.000000e+00> : vector<16xf32>
    %7 = vector.multi_reduction <add>, %6, %cst [0] : vector<8x16xf32> to vector<16xf32>
    %8 = vector.shape_cast %7 : vector<16xf32> to vector<1x16xf32>
    %cst_8 = arith.constant 1.250000e-01 : f32
    %9 = vector.broadcast %cst_8 : f32 to vector<1x16xf32>
    %10 = arith.mulf %8, %9 : vector<1x16xf32>
    %11 = vector.broadcast %10 : vector<1x16xf32> to vector<8x16xf32>
    %12 = arith.subf %6, %11 : vector<8x16xf32>
    %13 = arith.mulf %12, %12 : vector<8x16xf32>
    %cst_9 = arith.constant dense<0.000000e+00> : vector<16xf32>
    %14 = vector.multi_reduction <add>, %13, %cst_9 [0] : vector<8x16xf32> to vector<16xf32>
    %15 = vector.shape_cast %14 : vector<16xf32> to vector<1x16xf32>
    %cst_10 = arith.constant 1.250000e-01 : f32
    %16 = vector.broadcast %cst_10 : f32 to vector<1x16xf32>
    %17 = arith.mulf %15, %16 : vector<1x16xf32>
    %cst_11 = arith.constant 9.99999974E-6 : f32
    %18 = vector.broadcast %cst_11 : f32 to vector<1x16xf32>
    %19 = arith.addf %17, %18 : vector<1x16xf32>
    %20 = math.rsqrt %19 : vector<1x16xf32>
    %21 = arith.mulf %1, %20 : vector<1x16xf32>
    %22 = vector.broadcast %21 : vector<1x16xf32> to vector<8x16xf32>
    %23 = arith.mulf %12, %22 : vector<8x16xf32>
    %24 = vector.broadcast %2 : vector<1x16xf32> to vector<8x16xf32>
    %25 = arith.addf %23, %24 : vector<8x16xf32>
    %cst_12 = arith.constant dense<0.000000e+00> : vector<8x32xf32>
    %26 = tpu.matmul %25, %0, %cst_12 {dimension_numbers = #tpu.dot_dimension_numbers<[1], [0], [0], [1], [0, 0, 1, 1], [], []>, precision = #tpu.contract_precision<fp32>} : vector<8x16xf32>, vector<16x32xf32>, vector<8x32xf32> -> vector<8x32xf32>
    %27 = vector.broadcast %3 : vector<1x32xf32> to vector<8x32xf32>
    %28 = arith.addf %26, %27 : vector<8x32xf32>
    %cst_13 = arith.constant dense<0.000000e+00> : vector<32xf32>
    %29 = vector.multi_reduction <add>, %28, %cst_13 [0] : vector<8x32xf32> to vector<32xf32>
    %30 = vector.shape_cast %29 : vector<32xf32> to vector<1x32xf32>
    %cst_14 = arith.constant 1.250000e-01 : f32
    %31 = vector.broadcast %cst_14 : f32 to vector<1x32xf32>
    %32 = arith.mulf %30, %31 : vector<1x32xf32>
    %33 = vector.broadcast %32 : vector<1x32xf32> to vector<8x32xf32>
    %34 = arith.subf %28, %33 : vector<8x32xf32>
    %35 = arith.mulf %34, %34 : vector<8x32xf32>
    %cst_15 = arith.constant dense<0.000000e+00> : vector<32xf32>
    %36 = vector.multi_reduction <add>, %35, %cst_15 [0] : vector<8x32xf32> to vector<32xf32>
    %37 = vector.shape_cast %36 : vector<32xf32> to vector<1x32xf32>
    %cst_16 = arith.constant 1.250000e-01 : f32
    %38 = vector.broadcast %cst_16 : f32 to vector<1x32xf32>
    %39 = arith.mulf %37, %38 : vector<1x32xf32>
    %cst_17 = arith.constant 9.99999974E-6 : f32
    %40 = vector.broadcast %cst_17 : f32 to vector<1x32xf32>
    %41 = arith.addf %39, %40 : vector<1x32xf32>
    %42 = math.rsqrt %41 : vector<1x32xf32>
    %43 = arith.mulf %4, %42 : vector<1x32xf32>
    %44 = vector.broadcast %43 : vector<1x32xf32> to vector<8x32xf32>
    %45 = arith.mulf %34, %44 : vector<8x32xf32>
    %46 = vector.broadcast %5 : vector<1x32xf32> to vector<8x32xf32>
    %47 = arith.addf %45, %46 : vector<8x32xf32>
    %c0_18 = arith.constant 0 : index
    %c0_19 = arith.constant 0 : index
    %c0_20 = arith.constant 0 : index
    %48 = vector.load %arg2[%c0_18, %c0_19, %c0_20] : memref<1x8x32xf32, #tpu.memory_space<vmem>>, vector<1x8x32xf32>
    %49 = vector.shape_cast %48 : vector<1x8x32xf32> to vector<8x32xf32>
    %50 = vector.shape_cast %47 : vector<8x32xf32> to vector<1x8x32xf32>
    tpu.vector_store %arg2[%c0_18, %c0_19, %c0_20], %50 {strides = array<i32>} : memref<1x8x32xf32, #tpu.memory_space<vmem>>, vector<1x8x32xf32>,
    return
  }
}

</mosaic_0001>

<bundles_post_ra>
// kernel: tpu_custom_call.1
= control target key start
LH: loop header
LB: loop body
LE: loop exit
PB: predicated region body
PF: predicated region fallthrough
CT: control target
= control target key end

     0   :  { %7 = vsyncpa [#allocation3], 0  ;;  %s865_s0 = inlined_call_operand.hbm [shape: f32[8,16], index: 0, kind: input, shape index: {}]   ;;  %s866_s1 = inlined_call_operand.hbm [shape: f32[21,32], index: 1, kind: input, shape index: {}]   ;;  %s867_s2 = inlined_call_operand.hbm [shape: f32[1,8,32], index: 2, kind: output, shape index: {}]  }
   0x1   :  { %8 = vsyncpa [#allocation6], 0 }
   0x2   :  { %9 = vsyncpa [#allocation4], 0  ;;  %s768_s9 = smov [#allocation2]   ;;  %s769_s11 = smov [#allocation5]  }
   0x3   :  { %s16_s10 = sshll.u32 %s768_s9, 4  ;;  %s25_s12 = sshll.u32 %s769_s11, 4  ;;  %s17_s10 = int_to_ptr.vmem [resolvable:$true] %s16_s10  ;;  %s791_s12 = int_to_ptr.vmem [resolvable:$true] %s25_s12 }
   0x4   :  { %s696_s15 = scalar_lea.hbm %s865_s0, 128 }
   0x5   :  { %p697_p0 = scmp.ne.s32.totalorder %s865_s0, %s696_s15  ;;  %p700_p1 = scmp.lt.u32.totalorder %s696_s15, %s865_s0 }
   0x7   :  { %p702_p2 = pnand %p700_p1, %p697_p0 }
   0x9   :  { %705 = shalt.err (!%p702_p2)
}
   0xa   :  { %s706_s20 = scalar_lea.vmem %s17_s10, 128  ;;  %p711_p4 = scmp.lt.s32.totalorder %s17_s10, %s17_s10 }
   0xb   :  { %p707_p3 = scmp.ne.s32.totalorder %s17_s10, %s706_s20  ;;  %p712_p5 = scmp.lt.s32.totalorder %s706_s20, %s706_s20 }
   0xd   :  { %p713_p6 = por %p712_p5, %p711_p4 }
   0xf   :  { %p714_p7 = pnand %p713_p6, %p707_p3 }
  0x11   :  { %717 = shalt.err (!%p714_p7)
}
  0x12   :  { %19 = dma.hbm_to_vmem [thread:$0]  %s865_s0, 128, %s17_s10, [#allocation3]  }
  0x13   :  { %s718_s25 = scalar_lea.hbm %s866_s1, 384 }
  0x14   :  { %p719_p8 = scmp.ne.s32.totalorder %s866_s1, %s718_s25  ;;  %p722_p9 = scmp.lt.u32.totalorder %s718_s25, %s866_s1 }
  0x16   :  { %p724_p10 = pnand %p722_p9, %p719_p8 }
  0x18   :  { %727 = shalt.err (!%p724_p10)
}
  0x19   :  { %s728_s30 = scalar_lea.vmem %s791_s12, 384  ;;  %p733_p12 = scmp.lt.s32.totalorder %s791_s12, %s791_s12 }
  0x1a   :  { %p729_p11 = scmp.ne.s32.totalorder %s791_s12, %s728_s30  ;;  %p734_p13 = scmp.lt.s32.totalorder %s728_s30, %s728_s30 }
  0x1c   :  { %p735_p0 = por %p734_p13, %p733_p12 }
  0x1e   :  { %p736_p1 = pnand %p735_p0, %p729_p11 }
  0x20   :  { %739 = shalt.err (!%p736_p1)
}
  0x21   :  { %s770_s0 = smov 128   ;;  %s771_s3 = smov 8  }
  0x22   :  { %31 = dma.hbm_to_vmem [thread:$0]  %s866_s1, 384, %s791_s12, [#allocation6], %s770_s0, %s770_s0, %s771_s3  }
  0x23   :  { %762 = dma.done.wait [#allocation3], 128  }
  0x24   :  { %763 = vsyncadd [#allocation3], 4294967168 }
  0x25   :  { %764 = dma.done.wait [#allocation6], 384  }
  0x26   :  { %765 = vsyncadd [#allocation6], 4294966912  ;;  %v772_v0 = vmov 0.0|0.0   ;;  %vm773_vm0 = vmmov 0   ;;  %v774_v1 = vmov 0.0   ;;  %vm46_vm1 = vcmask 130048  }
  0x27   :  { %665 = vmatprep.subr.bf16.mxu0 %v772_v0  ;;  %656 = vmatprep.subr.bf16.mxu1 %v772_v0  ;;  %v38_v2 = vld [vmem:[#allocation5] sm:$0xff]  ;;  %v39_v3 = vld [vmem:[#allocation5 + $0x8] sm:$0xff]  ;;  %v45_v6 = vld [vmem:[#allocation2] sm:$0xff]  ;;  %v68_v27 = vlaneseq  ;;  %vm544_vm2 = vcmask 261120   ;;  %s775_s1 = smov [#allocation7]  }
  0x28   :  { %639 = vmatprep.mubr.msk.f32.mxu0 %vm773_vm0, %v774_v1  ;;  %618 = vmatprep.mubr.msk.f32.mxu1 %vm773_vm0, %v774_v1  ;;  %v86_v4 = vand.u32 4294901760, %v38_v2  ;;  %v89_v5 = vand.u32 4294901760, %v39_v3  ;;  %v47_v7 = vsel %vm46_vm1, %v45_v6, 0.0  ;;  %v40_v29 = vld [vmem:[#allocation5 + $0x10] sm:$0x1]  ;;  %s583_s6 = sshll.u32 %s775_s1, 4  ;;  %s584_s6 = int_to_ptr.vmem [resolvable:$true] %s583_s6 }
  0x29   :  { %v48_v9 = vrot.slane %v47_v7, 4  ;;  %v832_v28 = vshrl.u32 %v68_v27, 7  ;;  %v593_v36 = vld [vmem:[#allocation5 + $0x11] ss:$0 sm:$0xff]  ;;  %v594_v56 = vld [vmem:[#allocation5 + $0x12] ss:$0 sm:$0xff]  ;;  %p745_p3 = scmp.lt.s32.totalorder %s584_s6, %s584_s6 }
  0x2a   :  { %v657_v8 = vpack.c.bf16 %v89_v5, %v86_v4  ;;  %v164_v32 = vsub.f32 %v38_v2, %v86_v4  ;;  %v171_v33 = vsub.f32 %v39_v3, %v89_v5  ;;  %s740_s7 = scalar_lea.vmem %s584_s6, 128 }
  0x2b   :  { %v49_v10 = vadd.f32 %v48_v9, %v47_v7  ;;  %v70_v30 = vsub.s32 0, %v832_v28  ;;  %p741_p2 = scmp.ne.s32.totalorder %s584_s6, %s740_s7  ;;  %p746_p4 = scmp.lt.s32.totalorder %s740_s7, %s740_s7 }
  0x2c   :  { %667 = vmatpush3.bf16.msra.mxu0 %v657_v8  ;;  %658 = vmatpush3.bf16.msra.mxu1 %v657_v8  ;;  %v165_v38 = vand.u32 4294901760, %v164_v32  ;;  %v172_v39 = vand.u32 4294901760, %v171_v33  ;;  %v663_v53 = vpack.c.bf16 %v171_v33, %v164_v32 }
  0x2d   :  { %659 = vmatprep.subr.bf16.mxu1 %v772_v0  ;;  %668 = vmatprep.subr.bf16.mxu0 %v772_v0  ;;  %v50_v11 = vrot.slane %v49_v10, 2  ;;  %p747_p5 = por %p746_p4, %p745_p3 }
  0x2e   :  { %v166_v42 = vsub.f32 %v164_v32, %v165_v38  ;;  %v173_v43 = vsub.f32 %v171_v33, %v172_v39  ;;  %v669_v48 = vpack.c.bf16 %v172_v39, %v165_v38 }
  0x2f   :  { %v51_v12 = vadd.f32 %v50_v11, %v49_v10  ;;  %p748_p6 = pnand %p747_p5, %p741_p2 }
  0x30   :  { %v167_v46 = vand.u32 4294901760, %v166_v42  ;;  %v174_v47 = vand.u32 4294901760, %v173_v43 }
  0x31   :  { %v52_v13 = vrot.slane %v51_v12, 1 }
  0x32   :  { %v660_v51 = vpack.c.bf16 %v174_v47, %v167_v46 }
  0x33   :  { %v53_v14 = vadd.f32 %v52_v13, %v51_v12 }
  0x35   :  { %v54_v15 = vmul.f32 0.125, %v53_v14 }
  0x37   :  { %v55_v16 = vsub.f32 %v45_v6, %v54_v15 }
  0x39   :  { %v56_v17 = vmul.f32 %v55_v16, %v55_v16 }
  0x3b   :  { %v57_v18 = vsel %vm46_vm1, %v56_v17, 0.0 }
  0x3c   :  { %v58_v19 = vrot.slane %v57_v18, 4 }
  0x3e   :  { %v59_v20 = vadd.f32 %v58_v19, %v57_v18 }
  0x40   :  { %v60_v21 = vrot.slane %v59_v20, 2 }
  0x42   :  { %v61_v22 = vadd.f32 %v60_v21, %v59_v20  ;;  %v595_v20 = vld [vmem:[#allocation5 + $0x14] ss:$0 sm:$0xff] }
  0x44   :  { %v62_v23 = vrot.slane %v61_v22, 1 }
  0x46   :  { %v63_v24 = vadd.f32 %v62_v23, %v61_v22 }
  0x48   :  { %v64_v25 = vmul.f32 0.125, %v63_v24 }
  0x4a   :  { %v65_v26 = vadd.f32 1e-05, %v64_v25 }
  0x4c   :  { %692 = vrsqrt.f32 %v65_v26 }
  0x56   :  { %v693_v31 = vpop.eup %692 }
  0x57   :  { %v67_v34 = vmul.f32 %v693_v31, %v40_v29 }
  0x59   :  { %v71_v35 = vrot.slane %v67_v34, %v70_v30 }
  0x5b   :  { %v72_v37 = vmul.f32 %v71_v35, %v55_v16  ;;  %v43_v16 = vld [vmem:[#allocation5 + $0x13] sm:$0x1] }
  0x5d   :  { %v77_v40 = vadd.f32 %v593_v36, %v72_v37 }
  0x5f   :  { %v83_v41 = vsel %vm46_vm1, %v77_v40, 0 }
  0x60   :  { %v152_v44 = vand.u32 4294901760, %v83_v41 }
  0x62   :  { %v153_v45 = vsub.f32 %v83_v41, %v152_v44 }
  0x64   :  { %v154_v49 = vand.u32 4294901760, %v153_v45 }
  0x66   :  { %640 = vmatmul.mubr.f32.vlgmr.msra.gmra.mrb[0].mxu0 %v154_v49  ;;  %v155_v50 = vsub.f32 %v153_v45, %v154_v49 }
  0x67   :  { %670 = vmatpush3.bf16.msra.mxu0 %v669_v48  ;;  %646 = vmatprep.mubr.msk.f32.mxu0 %vm773_vm0, %v774_v1 }
  0x68   :  { %v156_v52 = vand.u32 4294901760, %v155_v50  ;;  %671 = vmatprep.subr.bf16.mxu0 %v772_v0 }
  0x6a   :  { %619 = vmatmul.mubr.f32.vlgmr.msra.gmra.mrb[0].mxu1 %v156_v52 }
  0x6b   :  { %661 = vmatpush3.bf16.msra.mxu1 %v660_v51  ;;  %625 = vmatprep.mubr.msk.f32.mxu1 %vm773_vm0, %v774_v1 }
  0x6c   :  { %662 = vmatprep.subr.bf16.mxu1 %v772_v0 }
  0x6e   :  { %647 = vmatmul.mubr.f32.vlgmr.msra.gmra.mrb[0].mxu0 %v152_v44 }
  0x6f   :  { %673 = vmatpush3.bf16.msra.mxu0 %v657_v8  ;;  %653 = vmatprep.mubr.msk.f32.mxu0 %vm773_vm0, %v774_v1 }
  0x72   :  { %626 = vmatmul.mubr.f32.vlgmr.msra.gmra.mrb[0].mxu1 %v152_v44 }
  0x73   :  { %664 = vmatpush3.bf16.msra.mxu1 %v663_v53  ;;  %632 = vmatprep.mubr.msk.f32.mxu1 %vm773_vm0, %v774_v1 }
  0x76   :  { %654 = vmatmul.mubr.f32.vlgmr.msra.gmra.mrb[0].mxu0 %v152_v44 }
  0x7a   :  { %633 = vmatmul.mubr.f32.vlgmr.msra.gmra.mrb[0].mxu1 %v153_v45 }
 0x149   :  { %v540_v54 = vpop.f32.mrb[0].mxu0 }
 0x14a   :  { %v655_v55 = vpop.f32.mrb[1].mxu0 }
 0x14d   :  { %v315_v57 = vpop.f32.mrb[0].mxu1 }
 0x14e   :  { %v674_v58 = vadd.f32 %v594_v56, %v315_v57  ;;  %v634_v59 = vpop.f32.mrb[1].mxu1 }
 0x150   :  { %v675_v60 = vadd.f32 %v674_v58, %v540_v54 }
 0x152   :  { %v545_v61 = vsel %vm544_vm2, %v675_v60, 0.0 }
 0x153   :  { %v546_v62 = vrot.slane %v545_v61, 4 }
 0x155   :  { %v547_v63 = vadd.f32 %v546_v62, %v545_v61 }
 0x157   :  { %v548_v0 = vrot.slane %v547_v63, 2 }
 0x159   :  { %v549_v2 = vadd.f32 %v548_v0, %v547_v63 }
 0x15b   :  { %v550_v3 = vrot.slane %v549_v2, 1 }
 0x15d   :  { %v551_v4 = vadd.f32 %v550_v3, %v549_v2 }
 0x15f   :  { %v552_v5 = vmul.f32 0.125, %v551_v4 }
 0x161   :  { %v553_v1 = vsub.f32 %v675_v60, %v552_v5 }
 0x163   :  { %v554_v6 = vmul.f32 %v553_v1, %v553_v1 }
 0x165   :  { %v555_v7 = vsel %vm544_vm2, %v554_v6, 0.0 }
 0x166   :  { %v556_v8 = vrot.slane %v555_v7, 4 }
 0x168   :  { %v557_v9 = vadd.f32 %v556_v8, %v555_v7 }
 0x16a   :  { %v558_v10 = vrot.slane %v557_v9, 2 }
 0x16c   :  { %v559_v11 = vadd.f32 %v558_v10, %v557_v9 }
 0x16e   :  { %v560_v12 = vrot.slane %v559_v11, 1 }
 0x170   :  { %v561_v13 = vadd.f32 %v560_v12, %v559_v11 }
 0x172   :  { %v562_v14 = vmul.f32 0.125, %v561_v13 }
 0x174   :  { %v563_v15 = vadd.f32 1e-05, %v562_v14 }
 0x176   :  { %694 = vrsqrt.f32 %v563_v15 }
 0x180   :  { %v695_v17 = vpop.eup %694 }
 0x181   :  { %v565_v18 = vmul.f32 %v695_v17, %v43_v16 }
 0x183   :  { %v569_v19 = vrot.slane %v565_v18, %v70_v30 }
 0x185   :  { %v570_v21 = vmul.f32 %v569_v19, %v553_v1 }
 0x187   :  { %v575_v22 = vadd.f32 %v595_v20, %v570_v21 }
 0x189   :  { %576 = vst.msk [vmem:[#allocation7] sm:$0xff] %vm544_vm2, %v575_v22 }
 0x18a   :  { %751 = shalt.err (!%p748_p6)
}
 0x18b   :  { %s752_s10 = scalar_lea.hbm %s867_s2, 128 }
 0x18c   :  { %p753_p7 = scmp.ne.s32.totalorder %s867_s2, %s752_s10  ;;  %p756_p8 = scmp.lt.u32.totalorder %s752_s10, %s867_s2 }
 0x18e   :  { %p758_p9 = pnand %p756_p8, %p753_p7 }
 0x190   :  { %761 = shalt.err (!%p758_p9)
}
 0x191   :  { %586 = dma.vmem_to_hbm [thread:$0]  %s584_s6, 128, %s867_s2, [#allocation4]  }
 0x192   :  { %766 = dma.done.wait [#allocation4], 128  }
 0x193   :  { %767 = vsyncadd [#allocation4], 4294967168 }
 0x194   :  { %590 = vsyncpa [#allocation3], 1 }
 0x195   :  { %591 = vsyncpa [#allocation6], 1 }
 0x196   :  { %592 = vsyncpa [#allocation4], 1 }

</bundles_post_ra>
